<compile_context>
chip_gen: v5e
topology: v5e:2x2
jax: 0.10.0
libtpu: 0.0.40
codegen_flags: <defaults>
</compile_context>

<pallas_src>
import math

import jax
import jax.numpy as jnp
from jax.experimental import pallas as pl
from jax.experimental.pallas import tpu as pltpu


def _cdiv(a, b):
    return -(-a // b)


def _round_up(a, b):
    return _cdiv(a, b) * b


# ---------------------------------------------------------------------------
# Kernel: one row-tile of X times a resident (K, out_cols) weight on the MXU,
# plus a scalar bias from SMEM.  Used both for the plain GEMV (K=F, out_cols=1)
# and for the small-F lane-folded variant (K=r*F, out_cols=r).
# ---------------------------------------------------------------------------
def _linear_tile_kernel(x_ref, w_ref, b_ref, o_ref):
    acc = jnp.dot(x_ref[...], w_ref[...], preferred_element_type=jnp.float32)
    o_ref[...] = (acc + b_ref[0, 0]).astype(o_ref.dtype)


# ---------------------------------------------------------------------------
# Generation-aware VMEM sizing (tile budget, scoped vmem limit).
# ---------------------------------------------------------------------------
def _vmem_budgets():
    cap = None
    try:
        info = pltpu.get_tpu_info()
        cap = getattr(info, "vmem_capacity_bytes", None)
    except Exception:
        cap = None
    if not cap:
        cap = 64 * 1024 * 1024                      # conservative (v7x per-TC)
    if cap >= 128 * 1024 * 1024:                    # v5e / v6e: 128 MiB VMEM
        return 48 * 1024 * 1024, 64 * 1024 * 1024
    return 24 * 1024 * 1024, 40 * 1024 * 1024       # v7x: 64 MiB per TC


_TARGET_HBM_BYTES_PER_STEP = 4 * 1024 * 1024   # amortize ~0.35 us per grid step
_MIN_GRID_STEPS = 8                            # pipeline overlap + 2-TC sharding


def _pick_tile_rows(rows, hbm_row_bytes, vmem_row_bytes, weight_vmem_bytes, budget):
    """Row-tile: multiple of 8, ~4 MiB of X per step, >= _MIN_GRID_STEPS steps."""
    if rows <= 8:
        return max(rows, 1)
    out_row_vmem = 128 * 4                       # output row lane-pads to 128
    per_row = 2 * (vmem_row_bytes + out_row_vmem)   # double-buffered in + out
    avail = max(budget - weight_vmem_bytes, per_row * 8)
    by_vmem = max(8, (avail // per_row) // 8 * 8)
    by_target = max(8, (_TARGET_HBM_BYTES_PER_STEP // hbm_row_bytes) // 8 * 8)
    by_steps = max(8, _round_up(_cdiv(rows, _MIN_GRID_STEPS), 8))
    tile = min(by_vmem, by_target, by_steps)
    return max(8, min(tile, _round_up(rows, 8)))


def _pick_fold(n, f):
    """Fold factor r (1 = no fold).  Folds r rows into the lane dim when F is
    small, but only when the (n, f) -> (n//r, r*f) reshape is free (r | n) so
    no extra HBM copy of X is introduced."""
    if f >= 128:
        return 1
    r_base = 128 // math.gcd(f, 128)             # minimal r with (r*f) % 128 == 0
    for m in (16, 8, 4, 2, 1):
        r = r_base * m
        if r * f * 4 > 16 * 1024:                # cap folded row width at 16 KiB
            continue
        if n % r == 0 and n // r >= 16:
            return r
    return 1


def _linear_call(x2d, w2d, b2d, tile_rows, vmem_limit):
    rows, k = x2d.shape
    out_cols = w2d.shape[1]
    grid = (pl.cdiv(rows, tile_rows),)
    return pl.pallas_call(
        _linear_tile_kernel,
        out_shape=jax.ShapeDtypeStruct((rows, out_cols), jnp.float32),
        grid=grid,
        in_specs=[
            pl.BlockSpec((tile_rows, k), lambda i: (i, 0)),        # X tile (streamed)
            pl.BlockSpec((k, out_cols), lambda i: (0, 0)),         # weight (resident)
            pl.BlockSpec(memory_space=pltpu.MemorySpace.SMEM),     # bias scalar
        ],
        out_specs=pl.BlockSpec((tile_rows, out_cols), lambda i: (i, 0)),
        compiler_params=pltpu.CompilerParams(
            dimension_semantics=("parallel",),     # shards N across TCs on v7x
            vmem_limit_bytes=vmem_limit,
        ),
        cost_estimate=pl.CostEstimate(
            flops=2 * rows * k * out_cols,
            transcendentals=0,
            bytes_accessed=rows * k * 4 + k * out_cols * 4 + rows * out_cols * 4,
        ),
    )(x2d, w2d, b2d)


def network_linear_regression_forward(x, weight, bias):
    """x: (N, F) f32, weight: (1, F) f32, bias: (1,) f32 -> (N, 1) f32."""
    n, f = x.shape
    x = x.astype(jnp.float32)
    w = jnp.asarray(weight, jnp.float32).reshape(f)
    b2d = jnp.asarray(bias, jnp.float32).reshape(1, 1)

    tile_budget, vmem_limit = _vmem_budgets()
    r = _pick_fold(n, f)

    if r > 1:
        # Small-F path: fold r consecutive rows into the lane dim.  The
        # reshape is a free contiguous bitcast; the block-diagonal (r*f, r)
        # weight makes the MXU emit the r per-row dot products at once, so the
        # output block is r lanes wide (fewer masked stores, no lane waste).
        g = n // r
        xf = x.reshape(g, r * f)
        w_bd = (jnp.eye(r, dtype=jnp.float32)[:, None, :] * w[None, :, None]
                ).reshape(r * f, r)
        w_vmem = 2 * _round_up(r * f, 8) * _round_up(r, 128) * 4
        tile = _pick_tile_rows(g,
                               hbm_row_bytes=r * f * 4,
                               vmem_row_bytes=r * f * 4,
                               weight_vmem_bytes=w_vmem,
                               budget=tile_budget)
        out = _linear_call(xf, w_bd, b2d, tile, vmem_limit)
        return out.reshape(n, 1)

    # Plain GEMV path: (N, F) @ (F, 1) on the MXU, ragged cdiv grid over N
    # (no wrapper-side padding copy of X).
    w_col = w.reshape(f, 1)
    w_vmem = 2 * _round_up(f, 8) * 128 * 4
    tile = _pick_tile_rows(n,
                           hbm_row_bytes=f * 4,
                           vmem_row_bytes=_round_up(f, 128) * 4,
                           weight_vmem_bytes=w_vmem,
                           budget=tile_budget)
    return _linear_call(x, w_col, b2d, tile, vmem_limit)


if __name__ == "__main__":
    key = jax.random.PRNGKey(0)
    ks = jax.random.split(key, 12)

    def run_case(kx, kw, kb, n, f):
        x = jax.random.normal(kx, (n, f), dtype=jnp.float32)
        bound = 1.0 / float(f) ** 0.5
        w = jax.random.uniform(kw, (1, f), minval=-bound, maxval=bound,
                               dtype=jnp.float32)
        b = jax.random.uniform(kb, (1,), minval=-bound, maxval=bound,
                               dtype=jnp.float32)
        out = jax.block_until_ready(network_linear_regression_forward(x, w, b))
        ref = x @ w.T + b
        assert out.shape == (n, 1), (out.shape, n)
        assert jnp.allclose(out, ref, atol=1e-4, rtol=1e-4), ("mismatch", n, f)

    # Small shape consistent with the module (N samples, n_features).
    run_case(ks[0], ks[1], ks[2], 8, 32)
    # Ragged N (not a multiple of the tile or of 8): cdiv grid, masked last block.
    run_case(ks[3], ks[4], ks[5], 300, 48)
    # Small-F lane-fold path (r=16: folded X is (16, 512), output (16, 16)).
    run_case(ks[6], ks[7], ks[8], 256, 32)
    # Wider feature dim (multiple of 128), ragged N, plain MXU GEMV path.
    run_case(ks[9], ks[10], ks[11], 200, 256)

    print("KERNEL_OK")
</pallas_src>

<mosaic_0001>
module attributes {stable_mosaic.version = 11 : i64} {
  func.func @_linear_tile_kernel(%arg0: i32, %arg1: memref<8x32xf32, #tpu.memory_space<vmem>>, %arg2: memref<32x1xf32, #tpu.memory_space<vmem>>, %arg3: memref<1x1xf32, #tpu.memory_space<smem>>, %arg4: memref<8x1xf32, #tpu.memory_space<vmem>>) attributes {dimension_semantics = [#tpu.dimension_semantics<parallel>], iteration_bounds = array<i64: 1>, scalar_prefetch = 0 : i64, scratch_operands = 0 : i64, tpu.core_type = #tpu.core_type<tc>, window_params = [{transform_indices = @transform_0, window_bounds = array<i64: 8, 32>}, {pipeline_mode = #tpu.pipeline_mode<synchronous>, transform_indices = @transform_1, window_bounds = array<i64: 32, 1>}, {transform_indices = @transform_2, window_bounds = array<i64: 1, 1>}, {transform_indices = @transform_3, window_bounds = array<i64: 8, 1>}]} {
    %c0 = arith.constant 0 : index
    %c0_0 = arith.constant 0 : index
    %0 = vector.load %arg1[%c0, %c0_0] : memref<8x32xf32, #tpu.memory_space<vmem>>, vector<8x32xf32>
    %c0_1 = arith.constant 0 : index
    %c0_2 = arith.constant 0 : index
    %1 = vector.load %arg2[%c0_1, %c0_2] : memref<32x1xf32, #tpu.memory_space<vmem>>, vector<32x1xf32>
    %cst = arith.constant dense<0.000000e+00> : vector<8x1xf32>
    %2 = tpu.matmul %0, %1, %cst {dimension_numbers = #tpu.dot_dimension_numbers<[1], [0], [0], [1], [0, 0, 1, 1], [], []>} : vector<8x32xf32>, vector<32x1xf32>, vector<8x1xf32> -> vector<8x1xf32>
    %c0_3 = arith.constant 0 : index
    %c0_4 = arith.constant 0 : index
    %3 = memref.load %arg3[%c0_3, %c0_4] : memref<1x1xf32, #tpu.memory_space<smem>>
    %4 = vector.broadcast %3 : f32 to vector<8x1xf32>
    %5 = arith.addf %2, %4 : vector<8x1xf32>
    %c0_5 = arith.constant 0 : index
    %c0_6 = arith.constant 0 : index
    %6 = vector.load %arg4[%c0_5, %c0_6] : memref<8x1xf32, #tpu.memory_space<vmem>>, vector<8x1xf32>
    tpu.vector_store %arg4[%c0_5, %c0_6], %5 {strides = array<i32>} : memref<8x1xf32, #tpu.memory_space<vmem>>, vector<8x1xf32>,
    return
  }
  func.func @transform_0(%arg0: i32) -> (i32, i32) {
    %c0_i32 = arith.constant 0 : i32
    %c0_i32_0 = arith.constant 0 : i32
    return %arg0, %c0_i32 : i32, i32
  }
  func.func @transform_1(%arg0: i32) -> (i32, i32) {
    %c0_i32 = arith.constant 0 : i32
    %c0_i32_0 = arith.constant 0 : i32
    %c0_i32_1 = arith.constant 0 : i32
    return %c0_i32, %c0_i32_0 : i32, i32
  }
  func.func @transform_2(%arg0: i32) -> (i32, i32) {
    %c0_i32 = arith.constant 0 : i32
    %c0_i32_0 = arith.constant 0 : i32
    %c0_i32_1 = arith.constant 0 : i32
    return %c0_i32, %c0_i32_0 : i32, i32
  }
  func.func @transform_3(%arg0: i32) -> (i32, i32) {
    %c0_i32 = arith.constant 0 : i32
    %c0_i32_0 = arith.constant 0 : i32
    return %arg0, %c0_i32 : i32, i32
  }
}

</mosaic_0001>

<bundles_post_ra>
// kernel: tpu_custom_call.1
= control target key start
LH: loop header
LB: loop body
LE: loop exit
PB: predicated region body
PF: predicated region fallthrough
CT: control target
= control target key end

     0   :  { %vm22_vm0 = vcmask 261120   ;;  %vm46_vm1 = vcmask 7168   ;;  %s94_s1 = inlined_call_operand.vmem [shape: f32[32,1], index: 1, kind: input, shape index: {}]   ;;  %s95_s0 = inlined_call_operand.vmem [shape: f32[8,32], index: 0, kind: input, shape index: {}]   ;;  %s96_s2 = inlined_call_operand.<no memory space> [shape: f32[1,1], index: 2, kind: input, shape index: {}]   ;;  %s97_s3 = inlined_call_operand.vmem [shape: f32[8,1], index: 3, kind: output, shape index: {}]  }
   0x1   :  { %v19_v0 = vld [vmem:[%s94_s1 + $0x18] sm:$0xff]  ;;  %v18_v1 = vld [vmem:[%s94_s1 + $0x10] sm:$0xff]  ;;  %v17_v2 = vld [vmem:[%s94_s1 + $0x8] sm:$0xff]  ;;  %v21_v5 = vstv %s96_s2 }
   0x2   :  { %38 = vmatpush.msra.mxu0 %v19_v0  ;;  %v16_v3 = vld [vmem:[%s94_s1] sm:$0xff] }
   0x3   :  { %v15_v4 = vld [vmem:[%s95_s0] sm:$0xff] }
   0x4   :  { %39 = vmatpush.msra.mxu0 %v18_v1 }
   0x6   :  { %40 = vmatpush.msra.mxu0 %v17_v2 }
   0x8   :  { %41 = vmatpush.msra.mxu0 %v16_v3 }
   0x9   :  { %52 = vmatmul.msk.f32.vlgmr.msra.gmra.mxu0 %vm22_vm0, %v15_v4 }
  0x86   :  { %v43_v6 = vpop.f32.mrf.mxu0 }
  0x87   :  { %v44_v7 = vadd.f32 %v43_v6, %v21_v5 }
  0x89   :  { %47 = vst.msk [vmem:[%s97_s3] sm:$0xff] %vm46_vm1, %v44_v7 }

</bundles_post_ra>
